<compile_context>
chip_gen: v5e
topology: v5e:2x2
jax: 0.10.0
libtpu: 0.0.40
codegen_flags: <defaults>
</compile_context>

<pallas_src>
import math
from functools import partial

import jax
import jax.numpy as jnp
from jax import lax
from jax.experimental import pallas as pl
from jax.experimental.pallas import tpu as pltpu


# ---------------------------------------------------------------------------
# Kernel: one (row-block, di) tile of the fused GEMM + 2x2 interleave.
# ---------------------------------------------------------------------------

def _upsample_kernel(x_ref, w_ref, b_ref, o_ref, *, compute_dtype):
    # x_ref : (tr*W, C_in)          pixels of `tr` consecutive (n, i) rows
    # w_ref : (2, C_in, 2*C_out)    both di halves, columns ordered (dj, co)
    # b_ref : (1, 2*C_out)          f32 bias tiled over dj
    # o_ref : (tr, 1, W, 2*C_out)   output rows 2*(n*H+i)+di, cols (j, dj, co)
    d = pl.program_id(1)
    x = x_ref[...]
    if compute_dtype is not None and x.dtype != compute_dtype:
        x = x.astype(compute_dtype)            # in-kernel cast, hidden by DMAs
    acc = jnp.dot(x, w_ref[d], preferred_element_type=jnp.float32)
    y = (acc + b_ref[...]).astype(o_ref.dtype)
    # (tr*W, 2*C_out) -> (tr, 1, W, 2*C_out): splits the second-minor dim only
    # (layout-preserving when W is a sublane multiple, which it is here).
    o_ref[...] = y.reshape(o_ref.shape)


# ---------------------------------------------------------------------------
# Tiling / VMEM budgeting helpers
# ---------------------------------------------------------------------------

def _rup(x, m):
    return (x + m - 1) // m * m


def _sublane(dtype):
    return max(8, 32 // jnp.dtype(dtype).itemsize)     # f32:8, bf16:16, int8:32


def _vmem_budget():
    # Generation-aware: ~45% of physical VMEM for pipeline buffers, ~70% cap
    # handed to the compiler. (v5e/v6e: 128 MiB per core, v7x: 64 MiB.)
    try:
        cap = int(pltpu.get_tpu_info().vmem_capacity_bytes)
    except Exception:
        cap = 64 << 20                                  # conservative fallback
    return int(cap * 0.45), int(cap * 0.70)


def _block_vmem_bytes(tr, W, c_in, two_c, x_dt, w_dt, o_dt):
    # Lane(128)/sublane-padded footprints of the VMEM blocks.
    xb, wb, ob = (jnp.dtype(d).itemsize for d in (x_dt, w_dt, o_dt))
    x_t = _rup(tr * W, _sublane(x_dt)) * _rup(c_in, 128) * xb
    o_t = tr * _rup(W, _sublane(o_dt)) * _rup(two_c, 128) * ob
    w_t = 2 * _rup(c_in, _sublane(w_dt)) * _rup(two_c, 128) * wb
    b_t = 8 * _rup(two_c, 128) * 4
    acc = _rup(tr * W, 8) * _rup(two_c, 128) * 4        # f32 accumulator value
    # Pallas double-buffers every operand. Weight/bias have constant index
    # maps so they are DMA'd only once, but two buffers are still allocated.
    # TODO(synk): pipeline_mode=pl.Buffered(1) on the constant weight/bias
    # specs would reclaim one of those buffers.
    return 2 * (x_t + o_t + w_t + b_t) + acc


def _choose_tr(nh, W, c_in, two_c, x_dt, w_dt, o_dt, target_pixels, budget):
    # tr = number of (n, i) input rows per block. tr*W must stay a multiple of
    # the input dtype's sublane count (or equal the full pixel count).
    sub = _sublane(x_dt)
    step = sub // math.gcd(W, sub)
    tr = max(1, target_pixels // max(W, 1))
    if tr >= nh:
        tr = nh                                         # full extent: legal
    else:
        tr = max(step, (tr // step) * step)
    while (tr > step and
           _block_vmem_bytes(tr, W, c_in, two_c, x_dt, w_dt, o_dt) > budget):
        tr = max(step, ((tr // 2) // step) * step)
    return max(1, min(tr, nh))


# ---------------------------------------------------------------------------
# NHWC-native entry point (preferred: no NCHW<->NHWC transposes)
# ---------------------------------------------------------------------------

def upsample_transp_conv_nhwc(x_nhwc, weight, bias, *, compute_dtype=None,
                              target_block_pixels=2048):
    """ConvTranspose2d(kernel_size=2, stride=2) on NHWC input.

    x_nhwc : (N, H, W, C_in)
    weight : (C_in, C_out, 2, 2)   (PyTorch ConvTranspose2d layout)
    bias   : (C_out,)
    returns: (N, 2H, 2W, C_out)    same dtype as x_nhwc
    """
    N, H, W, C_in = x_nhwc.shape
    C_out = weight.shape[1]
    two_c = 2 * C_out
    nh = N * H
    M = nh * W

    out_dtype = x_nhwc.dtype
    cdt = None if compute_dtype is None else jnp.dtype(compute_dtype)
    w_dtype = jnp.dtype(out_dtype) if cdt is None else cdt

    # X stays in its native dtype: contiguous (N*H*W, C_in) view, no cast pass.
    x_mat = x_nhwc.reshape(M, C_in)

    # Weight (C_in, C_out, di, dj) -> (di, C_in, dj*C_out + co); bias over dj.
    w_arr = jnp.transpose(weight, (2, 0, 3, 1)).reshape(2, C_in, two_c)
    w_arr = w_arr.astype(w_dtype)
    b_arr = jnp.tile(bias.astype(jnp.float32), (2,)).reshape(1, two_c)

    budget, vmem_limit = _vmem_budget()
    tr = _choose_tr(nh, W, C_in, two_c, x_mat.dtype, w_dtype, out_dtype,
                    target_block_pixels, budget)
    grid = (pl.cdiv(nh, tr), 2)

    cost = pl.CostEstimate(
        flops=2 * M * C_in * 4 * C_out,
        transcendentals=0,
        bytes_accessed=int(x_mat.size * x_mat.dtype.itemsize
                           + w_arr.size * jnp.dtype(w_dtype).itemsize
                           + b_arr.size * 4
                           + nh * 2 * W * two_c * jnp.dtype(out_dtype).itemsize),
    )

    y4 = pl.pallas_call(
        partial(_upsample_kernel, compute_dtype=cdt),
        out_shape=jax.ShapeDtypeStruct((nh, 2, W, two_c), out_dtype),
        grid_spec=pltpu.PrefetchScalarGridSpec(
            num_scalar_prefetch=0,
            grid=grid,
            in_specs=[
                # X block index does not depend on d -> reused across the
                # inner grid axis without a re-fetch.
                pl.BlockSpec((tr * W, C_in), lambda i, d: (i, 0)),
                # Constant index maps: weight/bias are DMA'd only once.
                pl.BlockSpec((2, C_in, two_c), lambda i, d: (0, 0, 0)),
                pl.BlockSpec((1, two_c), lambda i, d: (0, 0)),
            ],
            out_specs=pl.BlockSpec((tr, 1, W, two_c),
                                   lambda i, d: (i, d, 0, 0)),
        ),
        compiler_params=pltpu.CompilerParams(
            dimension_semantics=("parallel", "arbitrary"),
            vmem_limit_bytes=vmem_limit,
        ),
        cost_estimate=cost,
    )(x_mat, w_arr, b_arr)

    # (N*H, 2, W, 2*C_out) is already the final memory order; this reshape is a
    # contiguous re-view, not a data-movement pass.
    return y4.reshape(N, 2 * H, 2 * W, C_out)


# ---------------------------------------------------------------------------
# NCHW wrapper matching the PyTorch module's layout
# ---------------------------------------------------------------------------

def upsample_block_transp_conv(x_nchw, weight, bias, *, compute_dtype=None,
                               target_block_pixels=2048):
    """UpsampleBlock(up_mode='transp_conv') forward, NCHW in / NCHW out."""
    # TODO(synk): a native-NCHW formulation (transposed GEMM reading X as
    # (N, C_in, H*W) with the output relayout fused) would drop these two
    # boundary transposes; callers that can stay NHWC should call
    # upsample_transp_conv_nhwc directly.
    x_nhwc = jnp.transpose(x_nchw, (0, 2, 3, 1))
    y_nhwc = upsample_transp_conv_nhwc(x_nhwc, weight, bias,
                                       compute_dtype=compute_dtype,
                                       target_block_pixels=target_block_pixels)
    return jnp.transpose(y_nhwc, (0, 3, 1, 2))


# ---------------------------------------------------------------------------
# Pure-JAX reference + self-test
# ---------------------------------------------------------------------------

def _reference(x_nchw, weight, bias):
    # out[n, co, 2i+di, 2j+dj] = sum_ci x[n,ci,i,j] * W[ci,co,di,dj] + b[co]
    y6 = jnp.einsum("ncij,codk->noidjk", x_nchw, weight,
                    precision=lax.Precision.HIGHEST)
    N, C_out, H, _, W, _ = y6.shape
    y = y6.reshape(N, C_out, 2 * H, 2 * W)
    return y + bias[None, :, None, None]


def _check(name, out, ref, tol):
    err = float(jnp.max(jnp.abs(out - ref)))
    scale = float(jnp.max(jnp.abs(ref)))
    assert err <= tol * scale + 1e-3, f"{name}: err={err} scale={scale}"


if __name__ == "__main__":
    key = jax.random.PRNGKey(0)
    k = jax.random.split(key, 9)

    # Case A: module-sized shapes (N=2, C_in=4, C_out=8, H=W=16), f32 compute.
    x = jax.random.normal(k[0], (2, 4, 16, 16), dtype=jnp.float32)
    w = jax.random.normal(k[1], (4, 8, 2, 2), dtype=jnp.float32) * 0.1
    b = jax.random.normal(k[2], (8,), dtype=jnp.float32) * 0.1
    out = jax.block_until_ready(upsample_block_transp_conv(x, w, b))
    assert out.shape == (2, 8, 32, 32), out.shape
    _check("case A (f32)", out, _reference(x, w, b), 3e-2)

    # Case B: larger channels, bf16 compute on the MXU.
    x2 = jax.random.normal(k[3], (1, 128, 8, 8), dtype=jnp.float32)
    w2 = jax.random.normal(k[4], (128, 32, 2, 2), dtype=jnp.float32) * 0.05
    b2 = jax.random.normal(k[5], (32,), dtype=jnp.float32) * 0.05
    out2 = jax.block_until_ready(
        upsample_block_transp_conv(x2, w2, b2, compute_dtype=jnp.bfloat16))
    assert out2.shape == (1, 32, 16, 16), out2.shape
    _check("case B (bf16)", out2, _reference(x2, w2, b2), 5e-2)

    # Case C: row count not divisible by the block size (ragged tail) and a
    # small block target so the grid has several steps.
    x3 = jax.random.normal(k[6], (1, 16, 23, 16), dtype=jnp.float32)
    w3 = jax.random.normal(k[7], (16, 8, 2, 2), dtype=jnp.float32) * 0.1
    b3 = jax.random.normal(k[8], (8,), dtype=jnp.float32) * 0.1
    out3 = jax.block_until_ready(
        upsample_block_transp_conv(x3, w3, b3, target_block_pixels=128))
    assert out3.shape == (1, 8, 46, 32), out3.shape
    _check("case C (ragged)", out3, _reference(x3, w3, b3), 3e-2)

    print("KERNEL_OK")
</pallas_src>

<mosaic_0001>
module attributes {stable_mosaic.version = 11 : i64} {
  func.func @_upsample_kernel(%arg0: i32, %arg1: i32, %arg2: memref<512x4xf32, #tpu.memory_space<vmem>>, %arg3: memref<2x4x16xf32, #tpu.memory_space<vmem>>, %arg4: memref<1x16xf32, #tpu.memory_space<vmem>>, %arg5: memref<32x1x16x16xf32, #tpu.memory_space<vmem>>) attributes {dimension_semantics = [#tpu.dimension_semantics<parallel>, #tpu.dimension_semantics<arbitrary>], iteration_bounds = array<i64: 1, 2>, scalar_prefetch = 0 : i64, scratch_operands = 0 : i64, tpu.core_type = #tpu.core_type<tc>, window_params = [{transform_indices = @transform_0, window_bounds = array<i64: 512, 4>}, {pipeline_mode = #tpu.pipeline_mode<synchronous>, transform_indices = @transform_1, window_bounds = array<i64: 2, 4, 16>}, {pipeline_mode = #tpu.pipeline_mode<synchronous>, transform_indices = @transform_2, window_bounds = array<i64: 1, 16>}, {transform_indices = @transform_3, window_bounds = array<i64: 32, 1, 16, 16>}]} {
    %c0 = arith.constant 0 : index
    %c0_0 = arith.constant 0 : index
    %0 = vector.load %arg2[%c0, %c0_0] : memref<512x4xf32, #tpu.memory_space<vmem>>, vector<512x4xf32>
    %1 = arith.index_cast %arg1 : i32 to index
    %c0_1 = arith.constant 0 : index
    %c0_2 = arith.constant 0 : index
    %2 = vector.load %arg3[%1, %c0_1, %c0_2] : memref<2x4x16xf32, #tpu.memory_space<vmem>>, vector<1x4x16xf32>
    %3 = vector.shape_cast %2 : vector<1x4x16xf32> to vector<4x16xf32>
    %cst = arith.constant dense<0.000000e+00> : vector<512x16xf32>
    %4 = tpu.matmul %0, %3, %cst {dimension_numbers = #tpu.dot_dimension_numbers<[1], [0], [0], [1], [0, 0, 1, 1], [], []>} : vector<512x4xf32>, vector<4x16xf32>, vector<512x16xf32> -> vector<512x16xf32>
    %c0_3 = arith.constant 0 : index
    %c0_4 = arith.constant 0 : index
    %5 = vector.load %arg4[%c0_3, %c0_4] : memref<1x16xf32, #tpu.memory_space<vmem>>, vector<1x16xf32>
    %6 = vector.broadcast %5 : vector<1x16xf32> to vector<512x16xf32>
    %7 = arith.addf %4, %6 : vector<512x16xf32>
    %8 = vector.shape_cast %7 : vector<512x16xf32> to vector<32x1x16x16xf32>
    %c0_5 = arith.constant 0 : index
    %c0_6 = arith.constant 0 : index
    %c0_7 = arith.constant 0 : index
    %c0_8 = arith.constant 0 : index
    %9 = vector.load %arg5[%c0_5, %c0_6, %c0_7, %c0_8] : memref<32x1x16x16xf32, #tpu.memory_space<vmem>>, vector<32x1x16x16xf32>
    tpu.vector_store %arg5[%c0_5, %c0_6, %c0_7, %c0_8], %8 {strides = array<i32>} : memref<32x1x16x16xf32, #tpu.memory_space<vmem>>, vector<32x1x16x16xf32>,
    return
  }
  func.func @transform_0(%arg0: i32, %arg1: i32) -> (i32, i32) {
    %c0_i32 = arith.constant 0 : i32
    %c0_i32_0 = arith.constant 0 : i32
    return %arg0, %c0_i32 : i32, i32
  }
  func.func @transform_1(%arg0: i32, %arg1: i32) -> (i32, i32, i32) {
    %c0_i32 = arith.constant 0 : i32
    %c0_i32_0 = arith.constant 0 : i32
    %c0_i32_1 = arith.constant 0 : i32
    %c0_i32_2 = arith.constant 0 : i32
    return %c0_i32, %c0_i32_0, %c0_i32_1 : i32, i32, i32
  }
  func.func @transform_2(%arg0: i32, %arg1: i32) -> (i32, i32) {
    %c0_i32 = arith.constant 0 : i32
    %c0_i32_0 = arith.constant 0 : i32
    %c0_i32_1 = arith.constant 0 : i32
    return %c0_i32, %c0_i32_0 : i32, i32
  }
  func.func @transform_3(%arg0: i32, %arg1: i32) -> (i32, i32, i32, i32) {
    %c0_i32 = arith.constant 0 : i32
    %c0_i32_0 = arith.constant 0 : i32
    %c0_i32_1 = arith.constant 0 : i32
    return %arg0, %arg1, %c0_i32, %c0_i32_0 : i32, i32, i32, i32
  }
}

</mosaic_0001>

<bundles_post_ra>
// kernel: tpu_custom_call.1
= control target key start
LH: loop header
LB: loop body
LE: loop exit
PB: predicated region body
PF: predicated region fallthrough
CT: control target
= control target key end

     0   :  { %s1271_s12 = smov 0   ;;  %s1273_s13 = smov 0   ;;  %s1925_s0 = inlined_call_operand.vmem [shape: f32[512,4], index: 0, kind: input, shape index: {}]   ;;  %s1926_s1 = inlined_call_operand.vmem [shape: f32[2,4,16], index: 1, kind: input, shape index: {}]   ;;  %s1927_s2 = inlined_call_operand.vmem [shape: f32[1,16], index: 2, kind: input, shape index: {}]   ;;  %s1928_s3 = inlined_call_operand.vmem [shape: f32[32,2,16,16], index: 3, kind: output, shape index: {}]  }
   0x1   :  { %s1275_s14 = smov 0   ;;  %s1277_s15 = smov 0  }
   0x2   :  { %s1279_s16 = smov 0  }
   0x3 LB: > { %s1089_s17 = sadd.s32 4294967295, %s1249_s16   ;;  %s22_s18 = sadd.s32 1, %s1245_s15  ;;  %s1249_s16 = sphi %s1279_s16, %s13_s16   ;;  %s1245_s15 = sphi %s1277_s15, %s1933_s15   ;;  %s1241_s14 = sphi %s1275_s14, %s1932_s14   ;;  %s1237_s13 = sphi %s1273_s13, %s1931_s13   ;;  %s1233_s12 = sphi %s1271_s12, %s1930_s12  }
   0x4   : > { %p23_p0 = scmp.ge.s32.totalorder %s22_s18, 2  ;;  %s102_s19 = sadd.s32 1, %s1237_s13 }
   0x5   : > { %p112_p1 = scmp.ne.s32.totalorder %s1237_s13, %s1233_s12  ;;  %p113_p2 = scmp.eq.s32.totalorder %s1089_s17, 1 }
   0x6   : > { %s1935_s18 = smov (%p23_p0, %s22_s18), 0  ;;  %p1093_p4 = scmp.ge.s32.totalorder %s1249_s16, 1 }
   0x7   : > { %p1303_p3 = por %p113_p2, %p112_p1  ;;  %s98_s21 = ssub.s32 %s1245_s15, %s1935_s18 }
   0x8   : > { %p152_p5 = scmp.lt.s32.totalorder %s1249_s16, 3  ;;  %p100_p6 = scmp.eq.s32.totalorder %s98_s21, 0 }
   0xa   : > { %p153_p7 = pnand %p1093_p4, %p152_p5 }
   0xb   : > { %s1312_s22 = scalar_select %p100_p6, %s1237_s13, %s102_s19  }
   0xc   : > { %156 = sbr.rel (%p153_p7) target bundleno = 310 (0x136), region = 32  ;;  %s1095_s23 = sshll.u32 (!%p153_p7), %s1241_s14, 2 }
   0xd   : > { %s247_s26 = scalar_lea.vmem (!%p153_p7), %s1926_s1, %s1095_s23  ;;  %s172_s21 = sand.u32 (!%p153_p7), 1, %s1233_s12  }
   0xe   : > { %s1094_s23 = sshll.u32 (!%p153_p7), %s172_s21, 9 }
  0x11   : > { %vm446_vm0 = vcmask 1043456   ;;  %v214_v0 = vld [vmem:[%s1925_s0 + $0x100] sm:$0xff]  ;;  %vm253_vm1 = vcmask 31744   ;;  %v215_v5 = vld [vmem:[%s1925_s0 + $0x108] sm:$0xff]  ;;  %v216_v9 = vld [vmem:[%s1925_s0 + $0x110] sm:$0xff]  ;;  %vm659_vm2 = vcmask 130048  }
  0x12   : > { %v230_v1 = vld [vmem:[%s1925_s0 + $0x180] sm:$0xff]  ;;  %v231_v6 = vld [vmem:[%s1925_s0 + $0x188] sm:$0xff]  ;;  %v232_v10 = vld [vmem:[%s1925_s0 + $0x190] sm:$0xff]  ;;  %s1166_s12 = sshll.u32 (%p1303_p3), %s1241_s14, 4 }
  0x13   : > { %v248_v2 = vld [vmem:[%s247_s26] sm:$0xf]  ;;  %v183_v7 = vld [vmem:[%s1925_s0 + $0x8] sm:$0xff]  ;;  %v184_v11 = vld [vmem:[%s1925_s0 + $0x10] sm:$0xff]  ;;  %s1582_s26 = scalar_lea.vmem [#allocation2], %s1094_s23  ;;  %s1782_s29 = scalar_lea.vmem (%p1303_p3), %s1928_s3, %s1166_s12 }
  0x14   : > { %1168 = vmatpush.msk.msra.mxu2 %vm446_vm0, %v248_v2  ;;  %1169 = vmatpush.msk.msra.mxu3 %vm446_vm0, %v248_v2  ;;  %v182_v3 = vld [vmem:[%s1925_s0] sm:$0xff]  ;;  %v199_v8 = vld [vmem:[%s1925_s0 + $0x88] sm:$0xff]  ;;  %v200_v12 = vld [vmem:[%s1925_s0 + $0x90] sm:$0xff] }
  0x15   : > { %v198_v4 = vld [vmem:[%s1925_s0 + $0x80] sm:$0xff]  ;;  %1129 = vmatmul.msk.f32.vlgmr.msra.gmra.mxu2 %vm253_vm1, %v214_v0  ;;  %1145 = vmatmul.msk.f32.vlgmr.msra.gmra.mxu3 %vm253_vm1, %v230_v1  ;;  %v217_v13 = vld [vmem:[%s1925_s0 + $0x118] sm:$0xff]  ;;  %v219_v21 = vld [vmem:[%s1925_s0 + $0x128] sm:$0xff] }
  0x16   : > { %1096 = vmatpush.msk.msra.mxu0 %vm446_vm0, %v248_v2  ;;  %1167 = vmatpush.msk.msra.mxu1 %vm446_vm0, %v248_v2  ;;  %v233_v14 = vld [vmem:[%s1925_s0 + $0x198] sm:$0xff]  ;;  %v218_v17 = vld [vmem:[%s1925_s0 + $0x120] sm:$0xff]  ;;  %v235_v22 = vld [vmem:[%s1925_s0 + $0x1a8] sm:$0xff] }
  0x17   : > { %1097 = vmatmul.msk.f32.vlgmr.msra.gmra.mxu0 %vm253_vm1, %v182_v3  ;;  %1113 = vmatmul.msk.f32.vlgmr.msra.gmra.mxu1 %vm253_vm1, %v198_v4  ;;  %v185_v15 = vld [vmem:[%s1925_s0 + $0x18] sm:$0xff]  ;;  %v234_v18 = vld [vmem:[%s1925_s0 + $0x1a0] sm:$0xff]  ;;  %v187_v23 = vld [vmem:[%s1925_s0 + $0x28] sm:$0xff] }
  0x18   : > { %v201_v16 = vld [vmem:[%s1925_s0 + $0x98] sm:$0xff]  ;;  %v186_v19 = vld [vmem:[%s1925_s0 + $0x20] sm:$0xff]  ;;  %v203_v24 = vld [vmem:[%s1925_s0 + $0xa8] sm:$0xff] }
  0x19   : > { %v202_v20 = vld [vmem:[%s1925_s0 + $0xa0] sm:$0xff]  ;;  %v220_v25 = vld [vmem:[%s1925_s0 + $0x130] sm:$0xff]  ;;  %v221_v29 = vld [vmem:[%s1925_s0 + $0x138] sm:$0xff] }
  0x1a   : > { %v236_v26 = vld [vmem:[%s1925_s0 + $0x1b0] sm:$0xff]  ;;  %v237_v30 = vld [vmem:[%s1925_s0 + $0x1b8] sm:$0xff]  ;;  %v222_v33 = vld [vmem:[%s1925_s0 + $0x140] sm:$0xff] }
  0x1b   : > { %v188_v27 = vld [vmem:[%s1925_s0 + $0x30] sm:$0xff]  ;;  %v189_v31 = vld [vmem:[%s1925_s0 + $0x38] sm:$0xff]  ;;  %v238_v34 = vld [vmem:[%s1925_s0 + $0x1c0] sm:$0xff] }
  0x1c   : > { %v204_v28 = vld [vmem:[%s1925_s0 + $0xb0] sm:$0xff]  ;;  %v205_v32 = vld [vmem:[%s1925_s0 + $0xb8] sm:$0xff]  ;;  %v190_v35 = vld [vmem:[%s1925_s0 + $0x40] sm:$0xff] }
  0x1d   : > { %1130 = vmatmul.msk.f32.gmra.mxu2 %vm253_vm1, %v215_v5  ;;  %1146 = vmatmul.msk.f32.gmra.mxu3 %vm253_vm1, %v231_v6  ;;  %v206_v36 = vld [vmem:[%s1925_s0 + $0xc0] sm:$0xff]  ;;  %v223_v37 = vld [vmem:[%s1925_s0 + $0x148] sm:$0xff]  ;;  %v224_v41 = vld [vmem:[%s1925_s0 + $0x150] sm:$0xff] }
  0x1e   : > { %v239_v38 = vld [vmem:[%s1925_s0 + $0x1c8] sm:$0xff]  ;;  %v240_v42 = vld [vmem:[%s1925_s0 + $0x1d0] sm:$0xff]  ;;  %v225_v45 = vld [vmem:[%s1925_s0 + $0x158] sm:$0xff] }
  0x1f   : > { %1098 = vmatmul.msk.f32.gmra.mxu0 %vm253_vm1, %v183_v7  ;;  %1114 = vmatmul.msk.f32.gmra.mxu1 %vm253_vm1, %v199_v8  ;;  %v191_v39 = vld [vmem:[%s1925_s0 + $0x48] sm:$0xff]  ;;  %v192_v43 = vld [vmem:[%s1925_s0 + $0x50] sm:$0xff]  ;;  %v241_v46 = vld [vmem:[%s1925_s0 + $0x1d8] sm:$0xff] }
  0x20   : > { %v207_v40 = vld [vmem:[%s1925_s0 + $0xc8] sm:$0xff]  ;;  %v208_v44 = vld [vmem:[%s1925_s0 + $0xd0] sm:$0xff]  ;;  %v193_v47 = vld [vmem:[%s1925_s0 + $0x58] sm:$0xff] }
  0x21   : > { %v209_v48 = vld [vmem:[%s1925_s0 + $0xd8] sm:$0xff]  ;;  %v226_v49 = vld [vmem:[%s1925_s0 + $0x160] sm:$0xff]  ;;  %v227_v53 = vld [vmem:[%s1925_s0 + $0x168] sm:$0xff] }
  0x22   : > { %v242_v50 = vld [vmem:[%s1925_s0 + $0x1e0] sm:$0xff]  ;;  %v243_v54 = vld [vmem:[%s1925_s0 + $0x1e8] sm:$0xff]  ;;  %v228_v57 = vld [vmem:[%s1925_s0 + $0x170] sm:$0xff] }
  0x23   : > { %v194_v51 = vld [vmem:[%s1925_s0 + $0x60] sm:$0xff]  ;;  %v195_v55 = vld [vmem:[%s1925_s0 + $0x68] sm:$0xff]  ;;  %v244_v58 = vld [vmem:[%s1925_s0 + $0x1f0] sm:$0xff] }
  0x24   : > { %v210_v52 = vld [vmem:[%s1925_s0 + $0xe0] sm:$0xff]  ;;  %v211_v56 = vld [vmem:[%s1925_s0 + $0xe8] sm:$0xff]  ;;  %v196_v59 = vld [vmem:[%s1925_s0 + $0x70] sm:$0xff] }
  0x25   : > { %1131 = vmatmul.msk.f32.gmra.mxu2 %vm253_vm1, %v216_v9  ;;  %1147 = vmatmul.msk.f32.gmra.mxu3 %vm253_vm1, %v232_v10  ;;  %v212_v60 = vld [vmem:[%s1925_s0 + $0xf0] sm:$0xff]  ;;  %v229_v61 = vld [vmem:[%s1925_s0 + $0x178] sm:$0xff]  ;;  %v1578_v1 = vld [vmem:[%s1927_s2] ss:$0 sm:$0xff] }
  0x26   : > { %v245_v62 = vld [vmem:[%s1925_s0 + $0x1f8] sm:$0xff] }
  0x27   : > { %1099 = vmatmul.msk.f32.gmra.mxu0 %vm253_vm1, %v184_v11  ;;  %1115 = vmatmul.msk.f32.gmra.mxu1 %vm253_vm1, %v200_v12  ;;  %v197_v63 = vld [vmem:[%s1925_s0 + $0x78] sm:$0xff] }
  0x28   : > { %v213_v0 = vld [vmem:[%s1925_s0 + $0xf8] sm:$0xff] }
  0x2d   : > { %1132 = vmatmul.msk.f32.gmra.mxu2 %vm253_vm1, %v217_v13  ;;  %1148 = vmatmul.msk.f32.gmra.mxu3 %vm253_vm1, %v233_v14 }
  0x2f   : > { %1100 = vmatmul.msk.f32.gmra.mxu0 %vm253_vm1, %v185_v15  ;;  %1116 = vmatmul.msk.f32.gmra.mxu1 %vm253_vm1, %v201_v16 }
  0x35   : > { %1133 = vmatmul.msk.f32.gmra.mxu2 %vm253_vm1, %v218_v17  ;;  %1149 = vmatmul.msk.f32.gmra.mxu3 %vm253_vm1, %v234_v18 }
  0x37   : > { %1101 = vmatmul.msk.f32.gmra.mxu0 %vm253_vm1, %v186_v19  ;;  %1117 = vmatmul.msk.f32.gmra.mxu1 %vm253_vm1, %v202_v20 }
  0x3d   : > { %1134 = vmatmul.msk.f32.gmra.mxu2 %vm253_vm1, %v219_v21  ;;  %1150 = vmatmul.msk.f32.gmra.mxu3 %vm253_vm1, %v235_v22 }
  0x3f   : > { %1102 = vmatmul.msk.f32.gmra.mxu0 %vm253_vm1, %v187_v23  ;;  %1118 = vmatmul.msk.f32.gmra.mxu1 %vm253_vm1, %v203_v24 }
  0x45   : > { %1135 = vmatmul.msk.f32.gmra.mxu2 %vm253_vm1, %v220_v25  ;;  %1151 = vmatmul.msk.f32.gmra.mxu3 %vm253_vm1, %v236_v26 }
  0x47   : > { %1103 = vmatmul.msk.f32.gmra.mxu0 %vm253_vm1, %v188_v27  ;;  %1119 = vmatmul.msk.f32.gmra.mxu1 %vm253_vm1, %v204_v28 }
  0x4d   : > { %1136 = vmatmul.msk.f32.gmra.mxu2 %vm253_vm1, %v221_v29  ;;  %1152 = vmatmul.msk.f32.gmra.mxu3 %vm253_vm1, %v237_v30 }
  0x4f   : > { %1104 = vmatmul.msk.f32.gmra.mxu0 %vm253_vm1, %v189_v31  ;;  %1120 = vmatmul.msk.f32.gmra.mxu1 %vm253_vm1, %v205_v32 }
  0x55   : > { %1137 = vmatmul.msk.f32.gmra.mxu2 %vm253_vm1, %v222_v33  ;;  %1153 = vmatmul.msk.f32.gmra.mxu3 %vm253_vm1, %v238_v34 }
  0x57   : > { %1105 = vmatmul.msk.f32.gmra.mxu0 %vm253_vm1, %v190_v35  ;;  %1121 = vmatmul.msk.f32.gmra.mxu1 %vm253_vm1, %v206_v36 }
  0x5d   : > { %1138 = vmatmul.msk.f32.gmra.mxu2 %vm253_vm1, %v223_v37  ;;  %1154 = vmatmul.msk.f32.gmra.mxu3 %vm253_vm1, %v239_v38 }
  0x5f   : > { %1106 = vmatmul.msk.f32.gmra.mxu0 %vm253_vm1, %v191_v39  ;;  %1122 = vmatmul.msk.f32.gmra.mxu1 %vm253_vm1, %v207_v40 }
  0x65   : > { %1139 = vmatmul.msk.f32.gmra.mxu2 %vm253_vm1, %v224_v41  ;;  %1155 = vmatmul.msk.f32.gmra.mxu3 %vm253_vm1, %v240_v42 }
  0x67   : > { %1107 = vmatmul.msk.f32.gmra.mxu0 %vm253_vm1, %v192_v43  ;;  %1123 = vmatmul.msk.f32.gmra.mxu1 %vm253_vm1, %v208_v44 }
  0x6d   : > { %1140 = vmatmul.msk.f32.gmra.mxu2 %vm253_vm1, %v225_v45  ;;  %1156 = vmatmul.msk.f32.gmra.mxu3 %vm253_vm1, %v241_v46 }
  0x6f   : > { %1108 = vmatmul.msk.f32.gmra.mxu0 %vm253_vm1, %v193_v47  ;;  %1124 = vmatmul.msk.f32.gmra.mxu1 %vm253_vm1, %v209_v48 }
  0x75   : > { %1141 = vmatmul.msk.f32.gmra.mxu2 %vm253_vm1, %v226_v49  ;;  %1157 = vmatmul.msk.f32.gmra.mxu3 %vm253_vm1, %v242_v50 }
  0x77   : > { %1109 = vmatmul.msk.f32.gmra.mxu0 %vm253_vm1, %v194_v51  ;;  %1125 = vmatmul.msk.f32.gmra.mxu1 %vm253_vm1, %v210_v52 }
  0x7d   : > { %1142 = vmatmul.msk.f32.gmra.mxu2 %vm253_vm1, %v227_v53  ;;  %1158 = vmatmul.msk.f32.gmra.mxu3 %vm253_vm1, %v243_v54 }
  0x7f   : > { %1110 = vmatmul.msk.f32.gmra.mxu0 %vm253_vm1, %v195_v55  ;;  %1126 = vmatmul.msk.f32.gmra.mxu1 %vm253_vm1, %v211_v56 }
  0x85   : > { %1143 = vmatmul.msk.f32.gmra.mxu2 %vm253_vm1, %v228_v57  ;;  %1159 = vmatmul.msk.f32.gmra.mxu3 %vm253_vm1, %v244_v58 }
  0x87   : > { %1111 = vmatmul.msk.f32.gmra.mxu0 %vm253_vm1, %v196_v59  ;;  %1127 = vmatmul.msk.f32.gmra.mxu1 %vm253_vm1, %v212_v60 }
  0x8d   : > { %1144 = vmatmul.msk.f32.gmra.mxu2 %vm253_vm1, %v229_v61  ;;  %1160 = vmatmul.msk.f32.gmra.mxu3 %vm253_vm1, %v245_v62 }
  0x8f   : > { %1112 = vmatmul.msk.f32.gmra.mxu0 %vm253_vm1, %v197_v63  ;;  %1128 = vmatmul.msk.f32.gmra.mxu1 %vm253_vm1, %v213_v0 }
  0x94   : > { %v467_v2 = vpop.f32.mrf.mxu0  ;;  %v515_v3 = vpop.f32.mrf.mxu1 }
  0x95   : > { %v468_v4 = vadd.f32 %v1578_v1, %v467_v2  ;;  %v516_v5 = vadd.f32 %v1578_v1, %v515_v3 }
  0x97   : > { %660 = vst.msk [vmem:[%s1582_s26] sm:$0xff] %vm659_vm2, %v468_v4 }
  0x98   : > { %676 = vst.msk [vmem:[%s1582_s26 + $0x80] sm:$0xff] %vm659_vm2, %v516_v5  ;;  %v563_v6 = vpop.f32.mrf.mxu2  ;;  %v611_v7 = vpop.f32.mrf.mxu3 }
  0x99   : > { %v564_v8 = vadd.f32 %v1578_v1, %v563_v6  ;;  %v612_v9 = vadd.f32 %v1578_v1, %v611_v7 }
  0x9b   : > { %692 = vst.msk [vmem:[%s1582_s26 + $0x100] sm:$0xff] %vm659_vm2, %v564_v8 }
  0x9c   : > { %708 = vst.msk [vmem:[%s1582_s26 + $0x180] sm:$0xff] %vm659_vm2, %v612_v9  ;;  %v470_v10 = vpop.f32.mrf.mxu0  ;;  %v518_v11 = vpop.f32.mrf.mxu1 }
  0x9d   : > { %v471_v12 = vadd.f32 %v1578_v1, %v470_v10  ;;  %v519_v13 = vadd.f32 %v1578_v1, %v518_v11 }
  0x9f   : > { %661 = vst.msk [vmem:[%s1582_s26 + $0x8] sm:$0xff] %vm659_vm2, %v471_v12 }
  0xa0   : > { %677 = vst.msk [vmem:[%s1582_s26 + $0x88] sm:$0xff] %vm659_vm2, %v519_v13  ;;  %v566_v14 = vpop.f32.mrf.mxu2  ;;  %v614_v15 = vpop.f32.mrf.mxu3 }
  0xa1   : > { %v567_v16 = vadd.f32 %v1578_v1, %v566_v14  ;;  %v615_v17 = vadd.f32 %v1578_v1, %v614_v15 }
  0xa3   : > { %693 = vst.msk [vmem:[%s1582_s26 + $0x108] sm:$0xff] %vm659_vm2, %v567_v16 }
  0xa4   : > { %709 = vst.msk [vmem:[%s1582_s26 + $0x188] sm:$0xff] %vm659_vm2, %v615_v17  ;;  %v473_v18 = vpop.f32.mrf.mxu0  ;;  %v521_v19 = vpop.f32.mrf.mxu1 }
  0xa5   : > { %v474_v20 = vadd.f32 %v1578_v1, %v473_v18  ;;  %v522_v21 = vadd.f32 %v1578_v1, %v521_v19 }
  0xa7   : > { %662 = vst.msk [vmem:[%s1582_s26 + $0x10] sm:$0xff] %vm659_vm2, %v474_v20 }
  0xa8   : > { %678 = vst.msk [vmem:[%s1582_s26 + $0x90] sm:$0xff] %vm659_vm2, %v522_v21  ;;  %v569_v22 = vpop.f32.mrf.mxu2  ;;  %v617_v23 = vpop.f32.mrf.mxu3 }
  0xa9   : > { %v570_v24 = vadd.f32 %v1578_v1, %v569_v22  ;;  %v618_v25 = vadd.f32 %v1578_v1, %v617_v23 }
  0xab   : > { %694 = vst.msk [vmem:[%s1582_s26 + $0x110] sm:$0xff] %vm659_vm2, %v570_v24 }
  0xac   : > { %710 = vst.msk [vmem:[%s1582_s26 + $0x190] sm:$0xff] %vm659_vm2, %v618_v25  ;;  %v476_v26 = vpop.f32.mrf.mxu0  ;;  %v524_v27 = vpop.f32.mrf.mxu1 }
  0xad   : > { %v477_v28 = vadd.f32 %v1578_v1, %v476_v26  ;;  %v525_v29 = vadd.f32 %v1578_v1, %v524_v27 }
  0xaf   : > { %663 = vst.msk [vmem:[%s1582_s26 + $0x18] sm:$0xff] %vm659_vm2, %v477_v28 }
  0xb0   : > { %679 = vst.msk [vmem:[%s1582_s26 + $0x98] sm:$0xff] %vm659_vm2, %v525_v29  ;;  %v572_v30 = vpop.f32.mrf.mxu2  ;;  %v620_v31 = vpop.f32.mrf.mxu3 }
  0xb1   : > { %v573_v32 = vadd.f32 %v1578_v1, %v572_v30  ;;  %v621_v33 = vadd.f32 %v1578_v1, %v620_v31 }
  0xb3   : > { %695 = vst.msk [vmem:[%s1582_s26 + $0x118] sm:$0xff] %vm659_vm2, %v573_v32 }
  0xb4   : > { %711 = vst.msk [vmem:[%s1582_s26 + $0x198] sm:$0xff] %vm659_vm2, %v621_v33  ;;  %v479_v34 = vpop.f32.mrf.mxu0  ;;  %v527_v35 = vpop.f32.mrf.mxu1 }
  0xb5   : > { %v480_v36 = vadd.f32 %v1578_v1, %v479_v34  ;;  %v528_v37 = vadd.f32 %v1578_v1, %v527_v35 }
  0xb7   : > { %664 = vst.msk [vmem:[%s1582_s26 + $0x20] sm:$0xff] %vm659_vm2, %v480_v36 }
  0xb8   : > { %680 = vst.msk [vmem:[%s1582_s26 + $0xa0] sm:$0xff] %vm659_vm2, %v528_v37  ;;  %v575_v38 = vpop.f32.mrf.mxu2  ;;  %v623_v39 = vpop.f32.mrf.mxu3 }
  0xb9   : > { %v576_v40 = vadd.f32 %v1578_v1, %v575_v38  ;;  %v624_v41 = vadd.f32 %v1578_v1, %v623_v39 }
  0xbb   : > { %696 = vst.msk [vmem:[%s1582_s26 + $0x120] sm:$0xff] %vm659_vm2, %v576_v40 }
  0xbc   : > { %712 = vst.msk [vmem:[%s1582_s26 + $0x1a0] sm:$0xff] %vm659_vm2, %v624_v41  ;;  %v482_v42 = vpop.f32.mrf.mxu0  ;;  %v530_v43 = vpop.f32.mrf.mxu1 }
  0xbd   : > { %v483_v44 = vadd.f32 %v1578_v1, %v482_v42  ;;  %v531_v45 = vadd.f32 %v1578_v1, %v530_v43 }
  0xbf   : > { %665 = vst.msk [vmem:[%s1582_s26 + $0x28] sm:$0xff] %vm659_vm2, %v483_v44 }
  0xc0   : > { %681 = vst.msk [vmem:[%s1582_s26 + $0xa8] sm:$0xff] %vm659_vm2, %v531_v45  ;;  %v578_v46 = vpop.f32.mrf.mxu2  ;;  %v626_v47 = vpop.f32.mrf.mxu3 }
  0xc1   : > { %v579_v48 = vadd.f32 %v1578_v1, %v578_v46  ;;  %v627_v49 = vadd.f32 %v1578_v1, %v626_v47 }
  0xc3   : > { %697 = vst.msk [vmem:[%s1582_s26 + $0x128] sm:$0xff] %vm659_vm2, %v579_v48 }
  0xc4   : > { %713 = vst.msk [vmem:[%s1582_s26 + $0x1a8] sm:$0xff] %vm659_vm2, %v627_v49  ;;  %v485_v50 = vpop.f32.mrf.mxu0  ;;  %v533_v51 = vpop.f32.mrf.mxu1 }
  0xc5   : > { %v486_v52 = vadd.f32 %v1578_v1, %v485_v50  ;;  %v534_v53 = vadd.f32 %v1578_v1, %v533_v51 }
  0xc7   : > { %666 = vst.msk [vmem:[%s1582_s26 + $0x30] sm:$0xff] %vm659_vm2, %v486_v52 }
  0xc8   : > { %682 = vst.msk [vmem:[%s1582_s26 + $0xb0] sm:$0xff] %vm659_vm2, %v534_v53  ;;  %v581_v54 = vpop.f32.mrf.mxu2  ;;  %v629_v55 = vpop.f32.mrf.mxu3 }
  0xc9   : > { %v582_v56 = vadd.f32 %v1578_v1, %v581_v54  ;;  %v630_v57 = vadd.f32 %v1578_v1, %v629_v55 }
  0xcb   : > { %698 = vst.msk [vmem:[%s1582_s26 + $0x130] sm:$0xff] %vm659_vm2, %v582_v56 }
  0xcc   : > { %714 = vst.msk [vmem:[%s1582_s26 + $0x1b0] sm:$0xff] %vm659_vm2, %v630_v57  ;;  %v488_v58 = vpop.f32.mrf.mxu0  ;;  %v536_v59 = vpop.f32.mrf.mxu1 }
  0xcd   : > { %v489_v60 = vadd.f32 %v1578_v1, %v488_v58  ;;  %v537_v61 = vadd.f32 %v1578_v1, %v536_v59 }
  0xcf   : > { %667 = vst.msk [vmem:[%s1582_s26 + $0x38] sm:$0xff] %vm659_vm2, %v489_v60 }
  0xd0   : > { %683 = vst.msk [vmem:[%s1582_s26 + $0xb8] sm:$0xff] %vm659_vm2, %v537_v61  ;;  %v584_v62 = vpop.f32.mrf.mxu2  ;;  %v632_v63 = vpop.f32.mrf.mxu3 }
  0xd1   : > { %v585_v0 = vadd.f32 %v1578_v1, %v584_v62  ;;  %v633_v2 = vadd.f32 %v1578_v1, %v632_v63 }
  0xd3   : > { %699 = vst.msk [vmem:[%s1582_s26 + $0x138] sm:$0xff] %vm659_vm2, %v585_v0 }
  0xd4   : > { %715 = vst.msk [vmem:[%s1582_s26 + $0x1b8] sm:$0xff] %vm659_vm2, %v633_v2  ;;  %v491_v3 = vpop.f32.mrf.mxu0  ;;  %v539_v4 = vpop.f32.mrf.mxu1 }
  0xd5   : > { %v492_v5 = vadd.f32 %v1578_v1, %v491_v3  ;;  %v540_v6 = vadd.f32 %v1578_v1, %v539_v4  ;;  %v891_v4 = vld [vmem:[%s1582_s26] sm:$0xff] (%p1303_p3) }
  0xd6   : > { %892 = vst [vmem:[%s1782_s29] sm:$0xff] (%p1303_p3), %v891_v4 }
  0xd7   : > { %668 = vst.msk [vmem:[%s1582_s26 + $0x40] sm:$0xff] %vm659_vm2, %v492_v5  ;;  %v895_v5 = vld [vmem:[%s1582_s26 + $0x10] sm:$0xff] (%p1303_p3) }
  0xd8   : > { %684 = vst.msk [vmem:[%s1582_s26 + $0xc0] sm:$0xff] %vm659_vm2, %v540_v6  ;;  %v587_v7 = vpop.f32.mrf.mxu2  ;;  %v635_v8 = vpop.f32.mrf.mxu3  ;;  %v897_v6 = vld [vmem:[%s1582_s26 + $0x18] sm:$0xff] (%p1303_p3) }
  0xd9   : > { %v588_v9 = vadd.f32 %v1578_v1, %v587_v7  ;;  %v636_v10 = vadd.f32 %v1578_v1, %v635_v8  ;;  %v899_v7 = vld [vmem:[%s1582_s26 + $0x20] sm:$0xff] (%p1303_p3)  ;;  %896 = vst [vmem:[%s1782_s29 + $0x20] sm:$0xff] (%p1303_p3), %v895_v5  ;;  %v901_v8 = vld [vmem:[%s1582_s26 + $0x28] sm:$0xff] (%p1303_p3) }
  0xda   : > { %898 = vst [vmem:[%s1782_s29 + $0x28] sm:$0xff] (%p1303_p3), %v897_v6 }
  0xdb   : > { %700 = vst.msk [vmem:[%s1582_s26 + $0x140] sm:$0xff] %vm659_vm2, %v588_v9  ;;  %v903_v9 = vld [vmem:[%s1582_s26 + $0x30] sm:$0xff] (%p1303_p3) }
  0xdc   : > { %716 = vst.msk [vmem:[%s1582_s26 + $0x1c0] sm:$0xff] %vm659_vm2, %v636_v10  ;;  %v494_v11 = vpop.f32.mrf.mxu0  ;;  %v542_v12 = vpop.f32.mrf.mxu1  ;;  %v905_v10 = vld [vmem:[%s1582_s26 + $0x38] sm:$0xff] (%p1303_p3) }
  0xdd   : > { %v495_v13 = vadd.f32 %v1578_v1, %v494_v11  ;;  %v543_v14 = vadd.f32 %v1578_v1, %v542_v12  ;;  %900 = vst [vmem:[%s1782_s29 + $0x40] sm:$0xff] (%p1303_p3), %v899_v7 }
  0xde   : > { %902 = vst [vmem:[%s1782_s29 + $0x48] sm:$0xff] (%p1303_p3), %v901_v8  ;;  %v907_v11 = vld [vmem:[%s1582_s26 + $0x40] sm:$0xff] (%p1303_p3) }
  0xdf   : > { %669 = vst.msk [vmem:[%s1582_s26 + $0x48] sm:$0xff] %vm659_vm2, %v495_v13 }
  0xe0   : > { %685 = vst.msk [vmem:[%s1582_s26 + $0xc8] sm:$0xff] %vm659_vm2, %v543_v14  ;;  %v590_v15 = vpop.f32.mrf.mxu2  ;;  %v638_v16 = vpop.f32.mrf.mxu3 }
  0xe1   : > { %v591_v17 = vadd.f32 %v1578_v1, %v590_v15  ;;  %v639_v18 = vadd.f32 %v1578_v1, %v638_v16  ;;  %904 = vst [vmem:[%s1782_s29 + $0x60] sm:$0xff] (%p1303_p3), %v903_v9 }
  0xe2   : > { %906 = vst [vmem:[%s1782_s29 + $0x68] sm:$0xff] (%p1303_p3), %v905_v10 }
  0xe3   : > { %701 = vst.msk [vmem:[%s1582_s26 + $0x148] sm:$0xff] %vm659_vm2, %v591_v17 }
  0xe4   : > { %717 = vst.msk [vmem:[%s1582_s26 + $0x1c8] sm:$0xff] %vm659_vm2, %v639_v18  ;;  %v497_v19 = vpop.f32.mrf.mxu0  ;;  %v545_v20 = vpop.f32.mrf.mxu1 }
  0xe5   : > { %v498_v21 = vadd.f32 %v1578_v1, %v497_v19  ;;  %v546_v22 = vadd.f32 %v1578_v1, %v545_v20  ;;  %908 = vst [vmem:[%s1782_s29 + $0x80] sm:$0xff] (%p1303_p3), %v907_v11  ;;  %v923_v19 = vld [vmem:[%s1582_s26 + $0x80] sm:$0xff] (%p1303_p3)  ;;  %v925_v20 = vld [vmem:[%s1582_s26 + $0x88] sm:$0xff] (%p1303_p3) }
  0xe6   : > { %v909_v12 = vld [vmem:[%s1582_s26 + $0x48] sm:$0xff] (%p1303_p3)  ;;  %924 = vst [vmem:[%s1782_s29 + $0x100] sm:$0xff] (%p1303_p3), %v923_v19 }
  0xe7   : > { %670 = vst.msk [vmem:[%s1582_s26 + $0x50] sm:$0xff] %vm659_vm2, %v498_v21  ;;  %v927_v21 = vld [vmem:[%s1582_s26 + $0x90] sm:$0xff] (%p1303_p3) }
  0xe8   : > { %686 = vst.msk [vmem:[%s1582_s26 + $0xd0] sm:$0xff] %vm659_vm2, %v546_v22  ;;  %v593_v23 = vpop.f32.mrf.mxu2  ;;  %v641_v24 = vpop.f32.mrf.mxu3  ;;  %v929_v22 = vld [vmem:[%s1582_s26 + $0x98] sm:$0xff] (%p1303_p3) }
  0xe9   : > { %v594_v25 = vadd.f32 %v1578_v1, %v593_v23  ;;  %v642_v26 = vadd.f32 %v1578_v1, %v641_v24  ;;  %910 = vst [vmem:[%s1782_s29 + $0x88] sm:$0xff] (%p1303_p3), %v909_v12  ;;  %v931_v23 = vld [vmem:[%s1582_s26 + $0xa0] sm:$0xff] (%p1303_p3)  ;;  %v933_v24 = vld [vmem:[%s1582_s26 + $0xa8] sm:$0xff] (%p1303_p3) }
  0xea   : > { %926 = vst [vmem:[%s1782_s29 + $0x108] sm:$0xff] (%p1303_p3), %v925_v20 }
  0xeb   : > { %702 = vst.msk [vmem:[%s1582_s26 + $0x150] sm:$0xff] %vm659_vm2, %v594_v25  ;;  %v935_v25 = vld [vmem:[%s1582_s26 + $0xb0] sm:$0xff] (%p1303_p3) }
  0xec   : > { %718 = vst.msk [vmem:[%s1582_s26 + $0x1d0] sm:$0xff] %vm659_vm2, %v642_v26  ;;  %v500_v27 = vpop.f32.mrf.mxu0  ;;  %v548_v28 = vpop.f32.mrf.mxu1  ;;  %v937_v26 = vld [vmem:[%s1582_s26 + $0xb8] sm:$0xff] (%p1303_p3) }
  0xed   : > { %v501_v29 = vadd.f32 %v1578_v1, %v500_v27  ;;  %v549_v30 = vadd.f32 %v1578_v1, %v548_v28  ;;  %928 = vst [vmem:[%s1782_s29 + $0x120] sm:$0xff] (%p1303_p3), %v927_v21  ;;  %v939_v27 = vld [vmem:[%s1582_s26 + $0xc0] sm:$0xff] (%p1303_p3)  ;;  %v941_v28 = vld [vmem:[%s1582_s26 + $0xc8] sm:$0xff] (%p1303_p3) }
  0xee   : > { %v911_v13 = vld [vmem:[%s1582_s26 + $0x50] sm:$0xff] (%p1303_p3)  ;;  %930 = vst [vmem:[%s1782_s29 + $0x128] sm:$0xff] (%p1303_p3), %v929_v22 }
  0xef   : > { %671 = vst.msk [vmem:[%s1582_s26 + $0x58] sm:$0xff] %vm659_vm2, %v501_v29  ;;  %v943_v29 = vld [vmem:[%s1582_s26 + $0xd0] sm:$0xff] (%p1303_p3) }
  0xf0   : > { %687 = vst.msk [vmem:[%s1582_s26 + $0xd8] sm:$0xff] %vm659_vm2, %v549_v30  ;;  %v596_v31 = vpop.f32.mrf.mxu2  ;;  %v644_v32 = vpop.f32.mrf.mxu3 }
  0xf1   : > { %v597_v33 = vadd.f32 %v1578_v1, %v596_v31  ;;  %v645_v34 = vadd.f32 %v1578_v1, %v644_v32  ;;  %912 = vst [vmem:[%s1782_s29 + $0xa0] sm:$0xff] (%p1303_p3), %v911_v13 }
  0xf2   : > { %932 = vst [vmem:[%s1782_s29 + $0x140] sm:$0xff] (%p1303_p3), %v931_v23 }
  0xf3   : > { %703 = vst.msk [vmem:[%s1582_s26 + $0x158] sm:$0xff] %vm659_vm2, %v597_v33 }
  0xf4   : > { %719 = vst.msk [vmem:[%s1582_s26 + $0x1d8] sm:$0xff] %vm659_vm2, %v645_v34  ;;  %v503_v35 = vpop.f32.mrf.mxu0  ;;  %v551_v36 = vpop.f32.mrf.mxu1 }
  0xf5   : > { %v504_v37 = vadd.f32 %v1578_v1, %v503_v35  ;;  %v552_v38 = vadd.f32 %v1578_v1, %v551_v36  ;;  %934 = vst [vmem:[%s1782_s29 + $0x148] sm:$0xff] (%p1303_p3), %v933_v24  ;;  %v955_v35 = vld [vmem:[%s1582_s26 + $0x100] sm:$0xff] (%p1303_p3)  ;;  %v957_v36 = vld [vmem:[%s1582_s26 + $0x108] sm:$0xff] (%p1303_p3) }
  0xf6   : > { %v913_v14 = vld [vmem:[%s1582_s26 + $0x58] sm:$0xff] (%p1303_p3)  ;;  %936 = vst [vmem:[%s1782_s29 + $0x160] sm:$0xff] (%p1303_p3), %v935_v25 }
  0xf7   : > { %672 = vst.msk [vmem:[%s1582_s26 + $0x60] sm:$0xff] %vm659_vm2, %v504_v37  ;;  %v945_v30 = vld [vmem:[%s1582_s26 + $0xd8] sm:$0xff] (%p1303_p3)  ;;  %v959_v37 = vld [vmem:[%s1582_s26 + $0x110] sm:$0xff] (%p1303_p3) }
  0xf8   : > { %688 = vst.msk [vmem:[%s1582_s26 + $0xe0] sm:$0xff] %vm659_vm2, %v552_v38  ;;  %v599_v39 = vpop.f32.mrf.mxu2  ;;  %v647_v40 = vpop.f32.mrf.mxu3  ;;  %v961_v38 = vld [vmem:[%s1582_s26 + $0x118] sm:$0xff] (%p1303_p3) }
  0xf9   : > { %v600_v41 = vadd.f32 %v1578_v1, %v599_v39  ;;  %v648_v42 = vadd.f32 %v1578_v1, %v647_v40  ;;  %914 = vst [vmem:[%s1782_s29 + $0xa8] sm:$0xff] (%p1303_p3), %v913_v14  ;;  %v963_v39 = vld [vmem:[%s1582_s26 + $0x120] sm:$0xff] (%p1303_p3)  ;;  %v965_v40 = vld [vmem:[%s1582_s26 + $0x128] sm:$0xff] (%p1303_p3) }
  0xfa   : > { %938 = vst [vmem:[%s1782_s29 + $0x168] sm:$0xff] (%p1303_p3), %v937_v26 }
  0xfb   : > { %704 = vst.msk [vmem:[%s1582_s26 + $0x160] sm:$0xff] %vm659_vm2, %v600_v41  ;;  %v967_v41 = vld [vmem:[%s1582_s26 + $0x130] sm:$0xff] (%p1303_p3) }
  0xfc   : > { %720 = vst.msk [vmem:[%s1582_s26 + $0x1e0] sm:$0xff] %vm659_vm2, %v648_v42  ;;  %v506_v43 = vpop.f32.mrf.mxu0  ;;  %v554_v44 = vpop.f32.mrf.mxu1  ;;  %v969_v42 = vld [vmem:[%s1582_s26 + $0x138] sm:$0xff] (%p1303_p3) }
  0xfd   : > { %v507_v45 = vadd.f32 %v1578_v1, %v506_v43  ;;  %v555_v46 = vadd.f32 %v1578_v1, %v554_v44  ;;  %940 = vst [vmem:[%s1782_s29 + $0x180] sm:$0xff] (%p1303_p3), %v939_v27  ;;  %v971_v43 = vld [vmem:[%s1582_s26 + $0x140] sm:$0xff] (%p1303_p3)  ;;  %v973_v44 = vld [vmem:[%s1582_s26 + $0x148] sm:$0xff] (%p1303_p3) }
  0xfe   : > { %v915_v15 = vld [vmem:[%s1582_s26 + $0x60] sm:$0xff] (%p1303_p3)  ;;  %942 = vst [vmem:[%s1782_s29 + $0x188] sm:$0xff] (%p1303_p3), %v941_v28 }
  0xff   : > { %673 = vst.msk [vmem:[%s1582_s26 + $0x68] sm:$0xff] %vm659_vm2, %v507_v45  ;;  %v947_v31 = vld [vmem:[%s1582_s26 + $0xe0] sm:$0xff] (%p1303_p3)  ;;  %v975_v45 = vld [vmem:[%s1582_s26 + $0x150] sm:$0xff] (%p1303_p3) }
 0x100   : > { %689 = vst.msk [vmem:[%s1582_s26 + $0xe8] sm:$0xff] %vm659_vm2, %v555_v46  ;;  %v602_v47 = vpop.f32.mrf.mxu2  ;;  %v650_v48 = vpop.f32.mrf.mxu3  ;;  %v977_v46 = vld [vmem:[%s1582_s26 + $0x158] sm:$0xff] (%p1303_p3) }
 0x101   : > { %v603_v49 = vadd.f32 %v1578_v1, %v602_v47  ;;  %v651_v50 = vadd.f32 %v1578_v1, %v650_v48  ;;  %916 = vst [vmem:[%s1782_s29 + $0xc0] sm:$0xff] (%p1303_p3), %v915_v15 }
 0x102   : > { %944 = vst [vmem:[%s1782_s29 + $0x1a0] sm:$0xff] (%p1303_p3), %v943_v29  ;;  %v979_v47 = vld [vmem:[%s1582_s26 + $0x160] sm:$0xff] (%p1303_p3) }
 0x103   : > { %705 = vst.msk [vmem:[%s1582_s26 + $0x168] sm:$0xff] %vm659_vm2, %v603_v49 }
 0x104   : > { %721 = vst.msk [vmem:[%s1582_s26 + $0x1e8] sm:$0xff] %vm659_vm2, %v651_v50  ;;  %v509_v51 = vpop.f32.mrf.mxu0  ;;  %v557_v52 = vpop.f32.mrf.mxu1 }
 0x105   : > { %v510_v53 = vadd.f32 %v1578_v1, %v509_v51  ;;  %v558_v54 = vadd.f32 %v1578_v1, %v557_v52  ;;  %946 = vst [vmem:[%s1782_s29 + $0x1a8] sm:$0xff] (%p1303_p3), %v945_v30  ;;  %v987_v51 = vld [vmem:[%s1582_s26 + $0x180] sm:$0xff] (%p1303_p3)  ;;  %v989_v52 = vld [vmem:[%s1582_s26 + $0x188] sm:$0xff] (%p1303_p3) }
 0x106   : > { %v917_v16 = vld [vmem:[%s1582_s26 + $0x68] sm:$0xff] (%p1303_p3)  ;;  %948 = vst [vmem:[%s1782_s29 + $0x1c0] sm:$0xff] (%p1303_p3), %v947_v31 }
 0x107   : > { %674 = vst.msk [vmem:[%s1582_s26 + $0x70] sm:$0xff] %vm659_vm2, %v510_v53  ;;  %v949_v32 = vld [vmem:[%s1582_s26 + $0xe8] sm:$0xff] (%p1303_p3)  ;;  %v991_v53 = vld [vmem:[%s1582_s26 + $0x190] sm:$0xff] (%p1303_p3) }
 0x108   : > { %690 = vst.msk [vmem:[%s1582_s26 + $0xf0] sm:$0xff] %vm659_vm2, %v558_v54  ;;  %v605_v55 = vpop.f32.mrf.mxu2  ;;  %v653_v56 = vpop.f32.mrf.mxu3  ;;  %v993_v54 = vld [vmem:[%s1582_s26 + $0x198] sm:$0xff] (%p1303_p3) }
 0x109   : > { %v606_v57 = vadd.f32 %v1578_v1, %v605_v55  ;;  %v654_v58 = vadd.f32 %v1578_v1, %v653_v56  ;;  %918 = vst [vmem:[%s1782_s29 + $0xc8] sm:$0xff] (%p1303_p3), %v917_v16  ;;  %v995_v55 = vld [vmem:[%s1582_s26 + $0x1a0] sm:$0xff] (%p1303_p3)  ;;  %v997_v56 = vld [vmem:[%s1582_s26 + $0x1a8] sm:$0xff] (%p1303_p3) }
 0x10a   : > { %950 = vst [vmem:[%s1782_s29 + $0x1c8] sm:$0xff] (%p1303_p3), %v949_v32  ;;  %v981_v48 = vld [vmem:[%s1582_s26 + $0x168] sm:$0xff] (%p1303_p3) }
 0x10b   : > { %706 = vst.msk [vmem:[%s1582_s26 + $0x170] sm:$0xff] %vm659_vm2, %v606_v57  ;;  %v999_v57 = vld [vmem:[%s1582_s26 + $0x1b0] sm:$0xff] (%p1303_p3) }
 0x10c   : > { %722 = vst.msk [vmem:[%s1582_s26 + $0x1f0] sm:$0xff] %vm659_vm2, %v654_v58  ;;  %v512_v59 = vpop.f32.mrf.mxu0  ;;  %v560_v60 = vpop.f32.mrf.mxu1  ;;  %v1001_v58 = vld [vmem:[%s1582_s26 + $0x1b8] sm:$0xff] (%p1303_p3) }
 0x10d   : > { %v513_v61 = vadd.f32 %v1578_v1, %v512_v59  ;;  %v561_v62 = vadd.f32 %v1578_v1, %v560_v60  ;;  %956 = vst [vmem:[%s1782_s29 + $0x200] sm:$0xff] (%p1303_p3), %v955_v35  ;;  %v1003_v59 = vld [vmem:[%s1582_s26 + $0x1c0] sm:$0xff] (%p1303_p3)  ;;  %v1005_v60 = vld [vmem:[%s1582_s26 + $0x1c8] sm:$0xff] (%p1303_p3) }
 0x10e   : > { %v919_v17 = vld [vmem:[%s1582_s26 + $0x70] sm:$0xff] (%p1303_p3)  ;;  %958 = vst [vmem:[%s1782_s29 + $0x208] sm:$0xff] (%p1303_p3), %v957_v36 }
 0x10f   : > { %675 = vst.msk [vmem:[%s1582_s26 + $0x78] sm:$0xff] %vm659_vm2, %v513_v61  ;;  %v951_v33 = vld [vmem:[%s1582_s26 + $0xf0] sm:$0xff] (%p1303_p3) }
 0x110   : > { %691 = vst.msk [vmem:[%s1582_s26 + $0xf8] sm:$0xff] %vm659_vm2, %v561_v62  ;;  %v608_v63 = vpop.f32.mrf.mxu2  ;;  %v656_v0 = vpop.f32.mrf.mxu3  ;;  %730 = sbr.rel (!%p1303_p3) target bundleno = 310 (0x136), region = 36  ;;  %v1007_v61 = vld [vmem:[%s1582_s26 + $0x1d0] sm:$0xff] (%p1303_p3)  ;;  %v1009_v62 = vld [vmem:[%s1582_s26 + $0x1d8] sm:$0xff] (%p1303_p3) }
 0x111   : > { %v609_v2 = vadd.f32 %v1578_v1, %v608_v63  ;;  %v657_v3 = vadd.f32 %v1578_v1, %v656_v0  ;;  %v893_v1 = vld [vmem:[%s1582_s26 + $0x8] sm:$0xff] (%p1303_p3)  ;;  %920 = vst [vmem:[%s1782_s29 + $0xe0] sm:$0xff] (%p1303_p3), %v919_v17  ;;  %v1011_v63 = vld [vmem:[%s1582_s26 + $0x1e0] sm:$0xff] (%p1303_p3) }
 0x112   : > { %894 = vst [vmem:[%s1782_s29 + $0x8] sm:$0xff] (%p1303_p3), %v893_v1  ;;  %v983_v49 = vld [vmem:[%s1582_s26 + $0x170] sm:$0xff] (%p1303_p3)  ;;  %v1013_v0 = vld [vmem:[%s1582_s26 + $0x1e8] sm:$0xff] (%p1303_p3) }
 0x113   : > { %707 = vst.msk [vmem:[%s1582_s26 + $0x178] sm:$0xff] %vm659_vm2, %v609_v2  ;;  %v1015_v2 = vld [vmem:[%s1582_s26 + $0x1f0] sm:$0xff] (%p1303_p3) }
 0x114   : > { %723 = vst.msk [vmem:[%s1582_s26 + $0x1f8] sm:$0xff] %vm659_vm2, %v657_v3 }
 0x115   : > { %952 = vst [vmem:[%s1782_s29 + $0x1e0] sm:$0xff] %v951_v33 }
 0x116   : > { %v921_v18 = vld [vmem:[%s1582_s26 + $0x78] sm:$0xff]  ;;  %960 = vst [vmem:[%s1782_s29 + $0x220] sm:$0xff] %v959_v37 }
 0x117   : > { %922 = vst [vmem:[%s1782_s29 + $0xe8] sm:$0xff] %v921_v18  ;;  %v953_v34 = vld [vmem:[%s1582_s26 + $0xf8] sm:$0xff] }
 0x118   : > { %954 = vst [vmem:[%s1782_s29 + $0x1e8] sm:$0xff] %v953_v34 }
 0x119   : > { %962 = vst [vmem:[%s1782_s29 + $0x228] sm:$0xff] %v961_v38 }
 0x11a   : > { %964 = vst [vmem:[%s1782_s29 + $0x240] sm:$0xff] %v963_v39  ;;  %v985_v50 = vld [vmem:[%s1582_s26 + $0x178] sm:$0xff] }
 0x11b   : > { %966 = vst [vmem:[%s1782_s29 + $0x248] sm:$0xff] %v965_v40  ;;  %v1017_v3 = vld [vmem:[%s1582_s26 + $0x1f8] sm:$0xff] }
 0x11c   : > { %968 = vst [vmem:[%s1782_s29 + $0x260] sm:$0xff] %v967_v41 }
 0x11d   : > { %970 = vst [vmem:[%s1782_s29 + $0x268] sm:$0xff] %v969_v42 }
 0x11e   : > { %972 = vst [vmem:[%s1782_s29 + $0x280] sm:$0xff] %v971_v43 }
 0x11f   : > { %974 = vst [vmem:[%s1782_s29 + $0x288] sm:$0xff] %v973_v44 }
 0x120   : > { %976 = vst [vmem:[%s1782_s29 + $0x2a0] sm:$0xff] %v975_v45 }
 0x121   : > { %978 = vst [vmem:[%s1782_s29 + $0x2a8] sm:$0xff] %v977_v46 }
 0x122   : > { %980 = vst [vmem:[%s1782_s29 + $0x2c0] sm:$0xff] %v979_v47 }
 0x123   : > { %982 = vst [vmem:[%s1782_s29 + $0x2c8] sm:$0xff] %v981_v48 }
 0x124   : > { %984 = vst [vmem:[%s1782_s29 + $0x2e0] sm:$0xff] %v983_v49 }
 0x125   : > { %986 = vst [vmem:[%s1782_s29 + $0x2e8] sm:$0xff] %v985_v50 }
 0x126   : > { %988 = vst [vmem:[%s1782_s29 + $0x300] sm:$0xff] %v987_v51 }
 0x127   : > { %990 = vst [vmem:[%s1782_s29 + $0x308] sm:$0xff] %v989_v52 }
 0x128   : > { %992 = vst [vmem:[%s1782_s29 + $0x320] sm:$0xff] %v991_v53 }
 0x129   : > { %994 = vst [vmem:[%s1782_s29 + $0x328] sm:$0xff] %v993_v54 }
 0x12a   : > { %996 = vst [vmem:[%s1782_s29 + $0x340] sm:$0xff] %v995_v55 }
 0x12b   : > { %998 = vst [vmem:[%s1782_s29 + $0x348] sm:$0xff] %v997_v56 }
 0x12c   : > { %1000 = vst [vmem:[%s1782_s29 + $0x360] sm:$0xff] %v999_v57 }
 0x12d   : > { %1002 = vst [vmem:[%s1782_s29 + $0x368] sm:$0xff] %v1001_v58 }
 0x12e   : > { %1004 = vst [vmem:[%s1782_s29 + $0x380] sm:$0xff] %v1003_v59 }
 0x12f   : > { %1006 = vst [vmem:[%s1782_s29 + $0x388] sm:$0xff] %v1005_v60 }
 0x130   : > { %1008 = vst [vmem:[%s1782_s29 + $0x3a0] sm:$0xff] %v1007_v61 }
 0x131   : > { %1010 = vst [vmem:[%s1782_s29 + $0x3a8] sm:$0xff] %v1009_v62 }
 0x132   : > { %1012 = vst [vmem:[%s1782_s29 + $0x3c0] sm:$0xff] %v1011_v63 }
 0x133   : > { %1014 = vst [vmem:[%s1782_s29 + $0x3c8] sm:$0xff] %v1013_v0 }
 0x134   : > { %1016 = vst [vmem:[%s1782_s29 + $0x3e0] sm:$0xff] %v1015_v2 }
 0x135   : > { %1018 = vst [vmem:[%s1782_s29 + $0x3e8] sm:$0xff] %v1017_v3 }
 0x136 PF: > { %s13_s16 = sadd.s32 1, %s1249_s16   ;;  %s1930_s12 = smov %s1237_s13 }
 0x137   : > { %p10_p8 = scmp.ge.s32.totalorder %s13_s16, 4   ;;  %s1931_s13 = smov %s1312_s22 }
 0x138   : > { %s1932_s14 = smov %s1245_s15  ;;  %s1933_s15 = smov %s1935_s18 }
 0x139   :  { %12 = sbr.rel (!%p10_p8) target bundleno = 3 (0x3), region = 101 }

</bundles_post_ra>
